<compile_context>
chip_gen: v5e
topology: v5e:2x2
jax: 0.10.0
libtpu: 0.0.40
codegen_flags: <defaults>
</compile_context>

<pallas_src>
import jax
import jax.numpy as jnp
from jax import lax
from jax.experimental import pallas as pl
from jax.experimental.pallas import tpu as pltpu


# ---------------------------------------------------------------------------
# Kernel 1: batched input projection (hoisted off the serial critical path).
# ---------------------------------------------------------------------------
def proj_kernel(x_ref, w_ref, b_ref, o_ref):
  o_ref[...] = jnp.dot(x_ref[...], w_ref[...],
                       preferred_element_type=jnp.float32) + b_ref[...]


# ---------------------------------------------------------------------------
# Kernel 2: full sequential recurrence for one batch chunk.
# ---------------------------------------------------------------------------
def stack_rnn_recurrence_kernel(
    xproj_ref,        # (T, Bc, H)  precomputed x @ W_i2h + summed biases
    wrec_ref,         # (H+2S, H)   fused [h2h; s2h0; s2h1] weight
    whd_ref,          # (H, 4S)     fused [h2a | h2s] weight
    bhd_ref,          # (1, 4S)     fused [h2a | h2s] bias
    hid_out_ref,      # (T, Bc, H)  all hidden states (output)
):
  T, Bc, H = xproj_ref.shape
  S = whd_ref.shape[1] // 4
  TS = T * S

  # Hoisted loop invariants (JAX does not CSE broadcasts across unrolled steps).
  w_rec = wrec_ref[...]
  w_hd = whd_ref[...]
  b_hd = pl.broadcast_to(bhd_ref[...], (Bc, 4 * S))
  # Lane-iota mask for the pop boundary (deepest stack slot gets -1).
  pop_mask = lax.broadcasted_iota(jnp.int32, (Bc, TS), 1) >= (TS - S)

  def step(t, carry):
    h, stack = carry                       # vreg carries: (Bc,H), (Bc,T*S)
    xp = xproj_ref[t]                      # (Bc, H) precomputed projection

    st0 = stack[:, :S]                     # depth 0
    st1 = stack[:, S:2 * S]                # depth 1
    hin = jnp.concatenate([h, st0, st1], axis=1)           # (Bc, H+2S)
    h_new = jax.nn.sigmoid(
        xp + jnp.dot(hin, w_rec, preferred_element_type=jnp.float32))

    # Fused head matmul: [a0 | a1 | a2 | top_pre] in one (Bc, 4S) result.
    heads = jnp.dot(h_new, w_hd, preferred_element_type=jnp.float32) + b_hd
    a0 = heads[:, 0 * S:1 * S]
    a1 = heads[:, 1 * S:2 * S]
    a2 = heads[:, 2 * S:3 * S]
    top = jax.nn.sigmoid(heads[:, 3 * S:4 * S])

    # Softmax over the 3 actions (push / pop / no-op) per (b, s).  Exact
    # divide kept (approx reciprocal perturbs numerics past the 1e-4 check).
    m = jnp.maximum(a0, jnp.maximum(a1, a2))
    e0 = jnp.exp(a0 - m)
    e1 = jnp.exp(a1 - m)
    e2 = jnp.exp(a2 - m)
    inv = 1.0 / (e0 + e1 + e2)
    act0 = e0 * inv
    act1 = e1 * inv

    # push keeps the concat (it must inject `top` into the boundary lanes);
    # pop is a pure shift -> XLU roll + hoisted boundary mask with scalar -1.
    push = jnp.concatenate([top, stack[:, :TS - S]], axis=1)
    pop = jnp.where(pop_mask, -1.0, pltpu.roll(stack, TS - S, axis=1))

    # 2-tile algebraic blend (uses act0 + act1 + act2 == 1): one fewer lane
    # replication and one fewer full-width multiply per step.
    a0t = jnp.tile(act0, (1, T))
    a1t = jnp.tile(act1, (1, T))
    new_stack = stack + a0t * (push - stack) + a1t * (pop - stack)

    hid_out_ref[pl.ds(t, 1), :, :] = h_new[None, :, :]
    return h_new, new_stack

  # TODO(synk): nn.Dropout(0.1) on hidden is identity in eval mode; not modeled.
  h0 = jnp.zeros((Bc, H), jnp.float32)
  stack0 = jnp.zeros((Bc, TS), jnp.float32)
  lax.fori_loop(0, T, step, (h0, stack0), unroll=min(T, 8))


# ---------------------------------------------------------------------------
# Kernel 3: deferred, non-recurrent head (h2o -> relu -> fc) GEMM chain.
# ---------------------------------------------------------------------------
def head_kernel(h_ref, who_ref, bho_ref, wfc_ref, bfc_ref, out_ref):
  o = jnp.dot(h_ref[...], who_ref[...],
              preferred_element_type=jnp.float32) + bho_ref[...]
  out_ref[...] = jnp.dot(jax.nn.relu(o), wfc_ref[...],
                         preferred_element_type=jnp.float32) + bfc_ref[...]


# ---------------------------------------------------------------------------
# Shared row-tiled GEMM launcher (proj + head): 'parallel' row grid, weights
# single-buffered via pl.Buffered(1) since their index_map is constant.
# ---------------------------------------------------------------------------
def _row_tiled_call(kernel, x, weights, out_cols, *, row_block=256):
  rows, cols = x.shape
  rb = min(row_block, rows)                       # rows is a multiple of 8
  rows_pad = ((rows + rb - 1) // rb) * rb
  if rows_pad != rows:
    x = jnp.pad(x, ((0, rows_pad - rows), (0, 0)))
  in_specs = [pl.BlockSpec((rb, cols), lambda i: (i, 0))]
  for w in weights:
    in_specs.append(pl.BlockSpec(w.shape, lambda i: (0, 0),
                                 pipeline_mode=pl.Buffered(1)))
  out = pl.pallas_call(
      kernel,
      out_shape=jax.ShapeDtypeStruct((rows_pad, out_cols), jnp.float32),
      grid_spec=pltpu.PrefetchScalarGridSpec(
          num_scalar_prefetch=0,
          grid=(rows_pad // rb,),
          in_specs=in_specs,
          out_specs=pl.BlockSpec((rb, out_cols), lambda i: (i, 0)),
      ),
      compiler_params=pltpu.CompilerParams(
          dimension_semantics=("parallel",)),
  )(x, *weights)
  return out[:rows]


# ---------------------------------------------------------------------------
# Wrapper: embedding gather, weight fusion, three pallas_calls, final permute.
# ---------------------------------------------------------------------------
def stack_rnn_ae_forward(inputs, params, *, batch_block=8):
  # NOTE: at production batch sizes use batch_block=128-256 (MXU M-fill) while
  # keeping B_pad // batch_block >= 2 so both v7x TensorCores get work.
  emb_table = params["embedding"]                  # (V, D)
  B, T = inputs.shape
  D = emb_table.shape[1]
  H = params["w_h2h"].shape[0]
  S = params["w_h2s"].shape[1]
  O = params["w_h2o"].shape[1]
  V = params["w_fc"].shape[1]
  f32 = jnp.float32

  # Gather directly into (T, B, D): the time-major permute rides the gather
  # (no materialized transpose of the embedded tensor).
  emb = emb_table[inputs.T].astype(f32)

  # Pad batch to a multiple of the chunk size so VPU tiles use full sublanes.
  Bc = batch_block
  B_pad = ((B + Bc - 1) // Bc) * Bc
  if B_pad != B:
    emb = jnp.pad(emb, ((0, 0), (0, B_pad - B), (0, 0)))

  # --- Hoisted input projection: one big GEMM over all (t, b) rows. ---------
  w_i2h = params["w_i2h"].astype(f32)                              # (D, H)
  b_all = (params["b_i2h"] + params["b_h2h"] + params["b_s2h0"]
           + params["b_s2h1"]).reshape(1, H).astype(f32)
  xproj = _row_tiled_call(proj_kernel, emb.reshape(T * B_pad, D),
                          (w_i2h, b_all), H).reshape(T, B_pad, H)

  # --- Fused recurrence / head weights. -------------------------------------
  w_rec = jnp.concatenate(
      [params["w_h2h"], params["w_s2h0"], params["w_s2h1"]],
      axis=0).astype(f32)                                          # (H+2S, H)
  w_hd = jnp.concatenate([params["w_h2a"], params["w_h2s"]], axis=1).astype(f32)
  b_hd = jnp.concatenate(
      [params["b_h2a"], params["b_h2s"]]).reshape(1, 4 * S).astype(f32)
  # NOTE: on v6e/v7x at production sizes cast these (and xproj) to bf16 with
  # f32 accumulation; kept f32 here to preserve the exact 1e-4 check.

  def const_spec(shape):
    return pl.BlockSpec(shape, lambda b: (0,) * len(shape),
                        pipeline_mode=pl.Buffered(1))

  hidden_all = pl.pallas_call(
      stack_rnn_recurrence_kernel,
      out_shape=jax.ShapeDtypeStruct((T, B_pad, H), f32),
      grid_spec=pltpu.PrefetchScalarGridSpec(
          num_scalar_prefetch=0,
          grid=(B_pad // Bc,),                       # independent batch chunks
          in_specs=[
              pl.BlockSpec((T, Bc, H), lambda b: (0, b, 0)),
              const_spec(w_rec.shape),
              const_spec(w_hd.shape),
              const_spec(b_hd.shape),
          ],
          out_specs=pl.BlockSpec((T, Bc, H), lambda b: (0, b, 0)),
      ),
      compiler_params=pltpu.CompilerParams(
          dimension_semantics=("parallel",)),        # batch shards -> 2 TCs
  )(xproj, w_rec, w_hd, b_hd)
  # NOTE: at production T/H, stream the (T, Bc, H) blocks in T-chunks
  # (pltpu.emit_pipeline) and set vmem_limit_bytes — v7x has only 64 MiB VMEM.

  # --- Deferred head over all (t, b) rows, row-tiled. ------------------------
  w_ho = params["w_h2o"].astype(f32)
  b_ho = params["b_h2o"].reshape(1, O).astype(f32)
  w_fc = params["w_fc"].astype(f32)
  b_fc = params["b_fc"].reshape(1, V).astype(f32)
  logits = _row_tiled_call(head_kernel, hidden_all.reshape(T * B_pad, H),
                           (w_ho, b_ho, w_fc, b_fc), V)
  # NOTE: V (and 4S) below 128 lanes -> masked stores; pad to 128 zero columns
  # if shapes stay this small (disappears at production vocab/head widths).

  out = logits.reshape(T, B_pad, V)[:, :B]           # drop batch padding
  return jnp.transpose(out, (1, 2, 0))               # (B, V, T), as in PyTorch


# ---------------------------------------------------------------------------
# Pure-JAX reference mirroring the PyTorch module exactly (eval mode).
# ---------------------------------------------------------------------------
def reference_forward(inputs, params):
  emb_table = params["embedding"]
  B, T = inputs.shape
  H = params["w_h2h"].shape[0]
  S = params["w_h2s"].shape[1]
  emb = jnp.transpose(emb_table[inputs], (1, 0, 2)).astype(jnp.float32)

  hidden = jnp.zeros((B, H), jnp.float32)
  stack = jnp.zeros((B, T, S), jnp.float32)
  outs = []
  for t in range(T):
    x = emb[t]
    st0 = stack[:, 0]
    st1 = stack[:, 1]
    hidden = jax.nn.sigmoid(
        x @ params["w_i2h"] + params["b_i2h"]
        + hidden @ params["w_h2h"] + params["b_h2h"]
        + st0 @ params["w_s2h0"] + params["b_s2h0"]
        + st1 @ params["w_s2h1"] + params["b_s2h1"])
    a = (hidden @ params["w_h2a"] + params["b_h2a"]).reshape(B, 3, S)
    act = jax.nn.softmax(a, axis=1)
    top = jax.nn.sigmoid(hidden @ params["w_h2s"] + params["b_h2s"])
    push = jnp.concatenate([top[:, None, :], stack[:, :-1]], axis=1)
    pop = jnp.concatenate(
        [stack[:, 1:], jnp.full((B, 1, S), -1.0, jnp.float32)], axis=1)
    stack = (push * act[:, 0][:, None, :]
             + pop * act[:, 1][:, None, :]
             + stack * act[:, 2][:, None, :])
    outs.append(hidden @ params["w_h2o"] + params["b_h2o"])
  stacked = jnp.stack(outs, axis=0)                        # (T, B, O)
  out = jax.nn.relu(stacked) @ params["w_fc"] + params["b_fc"]
  return jnp.transpose(out, (1, 2, 0))                     # (B, V, T)


# ---------------------------------------------------------------------------
# Deterministic parameter init (shapes follow the module's __init__).
# ---------------------------------------------------------------------------
def init_params(key, d_model=32, vocab=8, mem=16):
  keys = jax.random.split(key, 17)

  def w(k, shape, scale=0.1):
    return (scale * jax.random.normal(k, shape)).astype(jnp.float32)

  return {
      "embedding": w(keys[0], (vocab, d_model), 1.0),
      "w_i2h": w(keys[1], (d_model, d_model)), "b_i2h": w(keys[2], (d_model,)),
      "w_h2h": w(keys[3], (d_model, d_model)), "b_h2h": w(keys[4], (d_model,)),
      "w_h2o": w(keys[5], (d_model, d_model)), "b_h2o": w(keys[6], (d_model,)),
      "w_h2a": w(keys[7], (d_model, 3 * mem)), "b_h2a": w(keys[8], (3 * mem,)),
      "w_h2s": w(keys[9], (d_model, mem)), "b_h2s": w(keys[10], (mem,)),
      "w_s2h0": w(keys[11], (mem, d_model)), "b_s2h0": w(keys[12], (d_model,)),
      "w_s2h1": w(keys[13], (mem, d_model)), "b_s2h1": w(keys[14], (d_model,)),
      "w_fc": w(keys[15], (d_model, vocab)), "b_fc": w(keys[16], (vocab,)),
  }


if __name__ == "__main__":
  D, V, S, B, T = 32, 8, 16, 2, 8        # d_model, vocab, mem_size, batch, seq
  key = jax.random.PRNGKey(0)
  pkey, ikey = jax.random.split(key)
  params = init_params(pkey, d_model=D, vocab=V, mem=S)
  inputs = jax.random.randint(ikey, (B, T), 0, V)          # token ids (B, T)

  out = jax.block_until_ready(stack_rnn_ae_forward(inputs, params))
  assert out.shape == (B, V, T), out.shape

  ref = reference_forward(inputs, params)
  if not jnp.allclose(out, ref, atol=1e-4, rtol=1e-4):
    max_err = jnp.max(jnp.abs(out - ref))
    raise AssertionError(
        f"Pallas kernel does not match JAX reference (max abs err {max_err})")

  print("KERNEL_OK")
</pallas_src>

<mosaic_0001>
module attributes {stable_mosaic.version = 11 : i64} {
  func.func @proj_kernel(%arg0: i32, %arg1: memref<64x32xf32, #tpu.memory_space<vmem>>, %arg2: memref<32x32xf32, #tpu.memory_space<vmem>>, %arg3: memref<1x32xf32, #tpu.memory_space<vmem>>, %arg4: memref<64x32xf32, #tpu.memory_space<vmem>>) attributes {dimension_semantics = [#tpu.dimension_semantics<parallel>], iteration_bounds = array<i64: 1>, scalar_prefetch = 0 : i64, scratch_operands = 0 : i64, tpu.core_type = #tpu.core_type<tc>, window_params = [{transform_indices = @transform_0, window_bounds = array<i64: 64, 32>}, {pipeline_mode = #tpu.pipeline_mode<synchronous>, transform_indices = @transform_1, window_bounds = array<i64: 32, 32>}, {pipeline_mode = #tpu.pipeline_mode<synchronous>, transform_indices = @transform_2, window_bounds = array<i64: 1, 32>}, {transform_indices = @transform_3, window_bounds = array<i64: 64, 32>}]} {
    %c0 = arith.constant 0 : index
    %c0_0 = arith.constant 0 : index
    %0 = vector.load %arg1[%c0, %c0_0] : memref<64x32xf32, #tpu.memory_space<vmem>>, vector<64x32xf32>
    %c0_1 = arith.constant 0 : index
    %c0_2 = arith.constant 0 : index
    %1 = vector.load %arg2[%c0_1, %c0_2] : memref<32x32xf32, #tpu.memory_space<vmem>>, vector<32x32xf32>
    %cst = arith.constant dense<0.000000e+00> : vector<64x32xf32>
    %2 = tpu.matmul %0, %1, %cst {dimension_numbers = #tpu.dot_dimension_numbers<[1], [0], [0], [1], [0, 0, 1, 1], [], []>} : vector<64x32xf32>, vector<32x32xf32>, vector<64x32xf32> -> vector<64x32xf32>
    %c0_3 = arith.constant 0 : index
    %c0_4 = arith.constant 0 : index
    %3 = vector.load %arg3[%c0_3, %c0_4] : memref<1x32xf32, #tpu.memory_space<vmem>>, vector<1x32xf32>
    %4 = vector.broadcast %3 : vector<1x32xf32> to vector<64x32xf32>
    %5 = arith.addf %2, %4 : vector<64x32xf32>
    %c0_5 = arith.constant 0 : index
    %c0_6 = arith.constant 0 : index
    %6 = vector.load %arg4[%c0_5, %c0_6] : memref<64x32xf32, #tpu.memory_space<vmem>>, vector<64x32xf32>
    tpu.vector_store %arg4[%c0_5, %c0_6], %5 {strides = array<i32>} : memref<64x32xf32, #tpu.memory_space<vmem>>, vector<64x32xf32>,
    return
  }
  func.func @transform_0(%arg0: i32) -> (i32, i32) {
    %c0_i32 = arith.constant 0 : i32
    %c0_i32_0 = arith.constant 0 : i32
    return %arg0, %c0_i32 : i32, i32
  }
  func.func @transform_1(%arg0: i32) -> (i32, i32) {
    %c0_i32 = arith.constant 0 : i32
    %c0_i32_0 = arith.constant 0 : i32
    %c0_i32_1 = arith.constant 0 : i32
    return %c0_i32, %c0_i32_0 : i32, i32
  }
  func.func @transform_2(%arg0: i32) -> (i32, i32) {
    %c0_i32 = arith.constant 0 : i32
    %c0_i32_0 = arith.constant 0 : i32
    %c0_i32_1 = arith.constant 0 : i32
    return %c0_i32, %c0_i32_0 : i32, i32
  }
  func.func @transform_3(%arg0: i32) -> (i32, i32) {
    %c0_i32 = arith.constant 0 : i32
    %c0_i32_0 = arith.constant 0 : i32
    return %arg0, %c0_i32 : i32, i32
  }
}

</mosaic_0001>

<bundles_post_ra>
// kernel: tpu_custom_call.1
= control target key start
LH: loop header
LB: loop body
LE: loop exit
PB: predicated region body
PF: predicated region fallthrough
CT: control target
= control target key end

     0   :  { %vm30_vm0 = vcmask 261120   ;;  %s228_s1 = inlined_call_operand.vmem [shape: f32[32,32], index: 1, kind: input, shape index: {}]   ;;  %s229_s0 = inlined_call_operand.vmem [shape: f32[64,32], index: 0, kind: input, shape index: {}]   ;;  %s230_s2 = inlined_call_operand.vmem [shape: f32[1,32], index: 2, kind: input, shape index: {}]   ;;  %s231_s3 = inlined_call_operand.vmem [shape: f32[64,32], index: 3, kind: output, shape index: {}]  }
   0x1   :  { %v25_v0 = vld [vmem:[%s228_s1 + $0x18] sm:$0xff]  ;;  %v24_v1 = vld [vmem:[%s228_s1 + $0x10] sm:$0xff]  ;;  %v23_v2 = vld [vmem:[%s228_s1 + $0x8] sm:$0xff] }
   0x2   :  { %117 = vmatpush.msra.mxu2 %v25_v0  ;;  %118 = vmatpush.msra.mxu3 %v25_v0  ;;  %v22_v3 = vld [vmem:[%s228_s1] sm:$0xff]  ;;  %v20_v5 = vld [vmem:[%s229_s0 + $0x30] sm:$0xff]  ;;  %v19_v8 = vld [vmem:[%s229_s0 + $0x28] sm:$0xff] }
   0x3   :  { %67 = vmatpush.msra.mxu0 %v25_v0  ;;  %116 = vmatpush.msra.mxu1 %v25_v0  ;;  %v18_v4 = vld [vmem:[%s229_s0 + $0x20] sm:$0xff]  ;;  %v16_v7 = vld [vmem:[%s229_s0 + $0x10] sm:$0xff]  ;;  %v21_v9 = vld [vmem:[%s229_s0 + $0x38] sm:$0xff] }
   0x4   :  { %120 = vmatpush.msra.mxu2 %v24_v1  ;;  %121 = vmatpush.msra.mxu3 %v24_v1  ;;  %v14_v6 = vld [vmem:[%s229_s0] sm:$0xff]  ;;  %v15_v10 = vld [vmem:[%s229_s0 + $0x8] sm:$0xff]  ;;  %v17_v11 = vld [vmem:[%s229_s0 + $0x18] sm:$0xff] }
   0x5   :  { %68 = vmatpush.msra.mxu0 %v24_v1  ;;  %119 = vmatpush.msra.mxu1 %v24_v1  ;;  %v128_v12 = vld [vmem:[%s230_s2] ss:$0 sm:$0xff] }
   0x6   :  { %123 = vmatpush.msra.mxu2 %v23_v2  ;;  %124 = vmatpush.msra.mxu3 %v23_v2 }
   0x7   :  { %69 = vmatpush.msra.mxu0 %v23_v2  ;;  %122 = vmatpush.msra.mxu1 %v23_v2 }
   0x8   :  { %126 = vmatpush.msra.mxu2 %v22_v3  ;;  %127 = vmatpush.msra.mxu3 %v22_v3 }
   0x9   :  { %112 = vmatmul.msk.f32.vlgmr.msra.gmra.mxu2 %vm30_vm0, %v18_v4  ;;  %114 = vmatmul.msk.f32.vlgmr.msra.gmra.mxu3 %vm30_vm0, %v20_v5 }
   0xa   :  { %70 = vmatpush.msra.mxu0 %v22_v3  ;;  %125 = vmatpush.msra.mxu1 %v22_v3 }
   0xb   :  { %108 = vmatmul.msk.f32.vlgmr.msra.gmra.mxu0 %vm30_vm0, %v14_v6  ;;  %110 = vmatmul.msk.f32.vlgmr.msra.gmra.mxu1 %vm30_vm0, %v16_v7 }
  0x11   :  { %113 = vmatmul.msk.f32.gmra.mxu2 %vm30_vm0, %v19_v8  ;;  %115 = vmatmul.msk.f32.gmra.mxu3 %vm30_vm0, %v21_v9 }
  0x13   :  { %109 = vmatmul.msk.f32.gmra.mxu0 %vm30_vm0, %v15_v10  ;;  %111 = vmatmul.msk.f32.gmra.mxu1 %vm30_vm0, %v17_v11 }
  0x88   :  { %v72_v13 = vpop.f32.mrf.mxu0  ;;  %v78_v14 = vpop.f32.mrf.mxu1 }
  0x89   :  { %v73_v15 = vadd.f32 %v128_v12, %v72_v13  ;;  %v79_v16 = vadd.f32 %v128_v12, %v78_v14 }
  0x8b   :  { %96 = vst.msk [vmem:[%s231_s3] sm:$0xff] %vm30_vm0, %v73_v15 }
  0x8c   :  { %98 = vst.msk [vmem:[%s231_s3 + $0x10] sm:$0xff] %vm30_vm0, %v79_v16  ;;  %v84_v17 = vpop.f32.mrf.mxu2  ;;  %v90_v18 = vpop.f32.mrf.mxu3 }
  0x8d   :  { %v85_v19 = vadd.f32 %v128_v12, %v84_v17  ;;  %v91_v20 = vadd.f32 %v128_v12, %v90_v18 }
  0x8f   :  { %100 = vst.msk [vmem:[%s231_s3 + $0x20] sm:$0xff] %vm30_vm0, %v85_v19 }
  0x90   :  { %102 = vst.msk [vmem:[%s231_s3 + $0x30] sm:$0xff] %vm30_vm0, %v91_v20  ;;  %v75_v21 = vpop.f32.mrf.mxu0  ;;  %v81_v22 = vpop.f32.mrf.mxu1 }
  0x91   :  { %v76_v23 = vadd.f32 %v128_v12, %v75_v21  ;;  %v82_v24 = vadd.f32 %v128_v12, %v81_v22 }
  0x93   :  { %97 = vst.msk [vmem:[%s231_s3 + $0x8] sm:$0xff] %vm30_vm0, %v76_v23 }
  0x94   :  { %99 = vst.msk [vmem:[%s231_s3 + $0x18] sm:$0xff] %vm30_vm0, %v82_v24  ;;  %v87_v25 = vpop.f32.mrf.mxu2  ;;  %v93_v26 = vpop.f32.mrf.mxu3 }
  0x95   :  { %v88_v27 = vadd.f32 %v128_v12, %v87_v25  ;;  %v94_v28 = vadd.f32 %v128_v12, %v93_v26 }
  0x97   :  { %101 = vst.msk [vmem:[%s231_s3 + $0x28] sm:$0xff] %vm30_vm0, %v88_v27 }
  0x98   :  { %103 = vst.msk [vmem:[%s231_s3 + $0x38] sm:$0xff] %vm30_vm0, %v94_v28 }

</bundles_post_ra>
